<compile_context>
chip_gen: v7x
topology: tpu7x:2x2x1
jax: 0.10.0
libtpu: 0.0.40
codegen_flags: <defaults>
</compile_context>

<pallas_src>
import functools

import jax
import jax.numpy as jnp
from jax import lax
from jax.experimental import pallas as pl
from jax.experimental.pallas import tpu as pltpu


# ------------------------------ Pallas kernel --------------------------------
def _attn_kernel(num_heads, batch, x_ref, bias_ref, wqkv_ref, wproj_ref,
                 pb_ref, o_ref):
    """Fused masked MHA for the whole (flattened) batch.

    x_ref    : (B*N, C)     f32   tokens, batch flattened into rows
    bias_ref : (N, N)       f32   additive mask bias (0 where A>0, -9e15 else)
    wqkv_ref : (C, 3C)      bf16  [Wq^T * scale | Wk^T | Wv^T]
    wproj_ref: (C, C)       bf16  Wproj^T
    pb_ref   : (1, C)       f32   proj bias
    o_ref    : (B*N, Cpad)  f32   lane-dense output (first C lanes valid)
    """
    BN, C = x_ref.shape
    N = bias_ref.shape[0]
    D = C // num_heads

    x = x_ref[...]                                   # (B*N, C) f32
    x_bf = x.astype(jnp.bfloat16)

    # Fused q/k/v projection for the whole batch: one MXU matmul against the
    # lane-dense (C, 3C) weight slab (qkv_bias=False in the module).
    qkv = jnp.dot(x_bf, wqkv_ref[...],
                  preferred_element_type=jnp.float32)     # (B*N, 3C) f32

    bias = bias_ref[...]                             # (N, N) f32
    wproj = wproj_ref[...]                           # (C, C) bf16

    y_rows = []
    for b in range(batch):                           # static unroll (tiny B)
        rows = slice(b * N, (b + 1) * N)
        acc = jnp.zeros((N, C), jnp.float32)         # proj-space accumulator
        for h in range(num_heads):                   # static unroll (tiny H)
            q = qkv[rows, h * D:(h + 1) * D].astype(jnp.bfloat16)          # (N,D)
            k = qkv[rows, C + h * D:C + (h + 1) * D].astype(jnp.bfloat16)  # (N,D)
            v = qkv[rows, 2 * C + h * D:2 * C + (h + 1) * D].astype(jnp.bfloat16)
            # scores (scale folded into Wq) + additive mask bias
            s = lax.dot_general(q, k, (((1,), (1,)), ((), ())),
                                preferred_element_type=jnp.float32) + bias  # (N,N)
            m = jnp.max(s, axis=-1, keepdims=True)
            e = jnp.exp(s - m)
            p = e * pl.reciprocal(jnp.sum(e, axis=-1, keepdims=True),
                                  approx=True)        # attn_drop(p=0) == identity
            o_h = jnp.dot(p.astype(jnp.bfloat16), v,
                          preferred_element_type=jnp.float32)               # (N,D)
            # Fold the output projection into the head loop (no head concat).
            acc = acc + jnp.dot(o_h.astype(jnp.bfloat16),
                                wproj[h * D:(h + 1) * D, :],
                                preferred_element_type=jnp.float32)          # (N,C)
        y_rows.append(acc)

    # Sublane (cheap) concat of per-batch blocks back to (B*N, C).
    y = jnp.concatenate(y_rows, axis=0) if batch > 1 else y_rows[0]
    # proj bias + residual, fused (proj_drop(p=0) == identity).
    y = y + pb_ref[...] + x

    # Lane-pad to >=128 lanes so the store is a full-width (unmasked) vst.
    pad = o_ref.shape[-1] - C
    if pad:
        y = jnp.concatenate([y, jnp.zeros((BN, pad), y.dtype)], axis=-1)
    o_ref[...] = y.astype(o_ref.dtype)


# ------------------------------ wrapper / glue -------------------------------
def make_attention_params(key, dim, num_heads):
    """Weights stored pre-transposed as (C_in, C_out) so Linear == x @ W_t + b."""
    kq, kkv, kp, kb = jax.random.split(key, 4)
    std = 0.02
    return dict(
        q_w=std * jax.random.normal(kq, (dim, dim), jnp.float32),
        kv_w=std * jax.random.normal(kkv, (dim, 2 * dim), jnp.float32),
        proj_w=std * jax.random.normal(kp, (dim, dim), jnp.float32),
        # module inits proj bias to 0; use a small random one to exercise the path
        proj_b=0.01 * jax.random.normal(kb, (dim,), jnp.float32),
    )


def attention_forward(x, A, params, num_heads):
    B, N, C = x.shape
    head_dim = C // num_heads
    scale = head_dim ** (-0.5)

    # Fold the 1/sqrt(D) scale into Wq; pack q|k|v columns; bf16 MXU feeds.
    w_qkv = jnp.concatenate([params["q_w"] * scale, params["kv_w"]],
                            axis=1).astype(jnp.bfloat16)        # (C, 3C)
    w_proj = params["proj_w"].astype(jnp.bfloat16)              # (C, C)
    b_proj = params["proj_b"].reshape(1, C).astype(jnp.float32)
    # Precomputed additive mask bias (f32, large-negative like the reference).
    mask_bias = jnp.where(A > 0, 0.0, -9e15).astype(jnp.float32)

    x2d = x.reshape(B * N, C)                         # free reshape in XLA
    c_pad = ((C + 127) // 128) * 128                  # lane-dense output width

    kernel = functools.partial(_attn_kernel, num_heads, B)
    out = pl.pallas_call(
        kernel,
        out_shape=jax.ShapeDtypeStruct((B * N, c_pad), x.dtype),
        grid=(1,),                                    # single invocation: whole batch
        in_specs=[
            pl.BlockSpec((B * N, C), lambda i: (0, 0)),      # x (flattened batch)
            pl.BlockSpec((N, N), lambda i: (0, 0)),          # additive mask bias
            pl.BlockSpec((C, 3 * C), lambda i: (0, 0)),      # packed qkv weights
            pl.BlockSpec((C, C), lambda i: (0, 0)),          # proj weights
            pl.BlockSpec((1, C), lambda i: (0, 0)),          # proj bias
        ],
        out_specs=pl.BlockSpec((B * N, c_pad), lambda i: (0, 0)),
        compiler_params=pltpu.CompilerParams(
            dimension_semantics=("arbitrary",)),
    )(x2d, mask_bias, w_qkv, w_proj, b_proj)
    return out[:, :C].reshape(B, N, C)


# --------------------------- pure-JAX reference ------------------------------
def attention_reference(x, A, params, num_heads):
    B, N, C = x.shape
    D = C // num_heads
    scale = D ** (-0.5)

    q = x @ params["q_w"]                                        # (B, N, C)
    kv = x @ params["kv_w"]                                      # (B, N, 2C)
    q = q.reshape(B, N, num_heads, D).transpose(0, 2, 1, 3)      # (B, H, N, D)
    kv = kv.reshape(B, N, 2, num_heads, D).transpose(2, 0, 3, 1, 4)
    k, v = kv[0], kv[1]                                          # (B, H, N, D)

    attn = jnp.einsum('bhnd,bhmd->bhnm', q, k) * scale
    attn = jnp.where(A[None, None] > 0, attn, jnp.float32(-9e15))
    attn = jax.nn.softmax(attn, axis=-1)
    o = jnp.einsum('bhnm,bhmd->bhnd', attn, v)
    o = o.transpose(0, 2, 1, 3).reshape(B, N, C)
    o = o @ params["proj_w"] + params["proj_b"]
    return o + x


# ------------------------------------ main ------------------------------------
if __name__ == "__main__":
    B, N, C = 2, 16, 64          # batch, tokens, dim (dim % num_heads == 0)
    num_heads = 4

    key = jax.random.PRNGKey(0)
    kx, ka, kp = jax.random.split(key, 3)
    x = jax.random.normal(kx, (B, N, C), jnp.float32)
    # adjacency mask: random 0/1 with guaranteed self-loops so no row is empty
    A = (jax.random.uniform(ka, (N, N)) > 0.5).astype(jnp.float32)
    A = jnp.maximum(A, jnp.eye(N, dtype=jnp.float32))
    params = make_attention_params(kp, C, num_heads)

    fwd = jax.jit(functools.partial(attention_forward, num_heads=num_heads))
    out = jax.block_until_ready(fwd(x, A, params))
    assert out.shape == (B, N, C)

    ref = attention_reference(x, A, params, num_heads)
    err = float(jnp.max(jnp.abs(out - ref)))
    # Tolerance accounts for bf16 MXU feeds + approx reciprocal (f32 reference).
    if not jnp.allclose(out, ref, rtol=5e-3, atol=5e-3):
        raise AssertionError(f"mismatch vs reference, max abs err {err}")
    print("KERNEL_OK")
</pallas_src>

<mosaic_0001>
module attributes {stable_mosaic.version = 11 : i64} {
  func.func @_attn_kernel(%arg0: i32, %arg1: memref<32x64xf32, #tpu.memory_space<vmem>>, %arg2: memref<16x16xf32, #tpu.memory_space<vmem>>, %arg3: memref<64x192xbf16, #tpu.memory_space<vmem>>, %arg4: memref<64x64xbf16, #tpu.memory_space<vmem>>, %arg5: memref<1x64xf32, #tpu.memory_space<vmem>>, %arg6: memref<32x128xf32, #tpu.memory_space<vmem>>) attributes {dimension_semantics = [#tpu.dimension_semantics<arbitrary>], iteration_bounds = array<i64: 1>, scalar_prefetch = 0 : i64, scratch_operands = 0 : i64, tpu.core_type = #tpu.core_type<tc>, window_params = [{pipeline_mode = #tpu.pipeline_mode<synchronous>, transform_indices = @transform_0, window_bounds = array<i64: 32, 64>}, {pipeline_mode = #tpu.pipeline_mode<synchronous>, transform_indices = @transform_1, window_bounds = array<i64: 16, 16>}, {pipeline_mode = #tpu.pipeline_mode<synchronous>, transform_indices = @transform_2, window_bounds = array<i64: 64, 192>}, {pipeline_mode = #tpu.pipeline_mode<synchronous>, transform_indices = @transform_3, window_bounds = array<i64: 64, 64>}, {pipeline_mode = #tpu.pipeline_mode<synchronous>, transform_indices = @transform_4, window_bounds = array<i64: 1, 64>}, {pipeline_mode = #tpu.pipeline_mode<synchronous>, transform_indices = @transform_5, window_bounds = array<i64: 32, 128>}]} {
    %c0 = arith.constant 0 : index
    %c0_0 = arith.constant 0 : index
    %0 = vector.load %arg1[%c0, %c0_0] : memref<32x64xf32, #tpu.memory_space<vmem>>, vector<32x64xf32>
    %1 = arith.truncf %0 : vector<32x64xf32> to vector<32x64xbf16>
    %c0_1 = arith.constant 0 : index
    %c0_2 = arith.constant 0 : index
    %2 = vector.load %arg3[%c0_1, %c0_2] : memref<64x192xbf16, #tpu.memory_space<vmem>>, vector<64x192xbf16>
    %cst = arith.constant dense<0.000000e+00> : vector<32x192xf32>
    %3 = tpu.matmul %1, %2, %cst {dimension_numbers = #tpu.dot_dimension_numbers<[1], [0], [0], [1], [0, 0, 1, 1], [], []>} : vector<32x64xbf16>, vector<64x192xbf16>, vector<32x192xf32> -> vector<32x192xf32>
    %c0_3 = arith.constant 0 : index
    %c0_4 = arith.constant 0 : index
    %4 = vector.load %arg2[%c0_3, %c0_4] : memref<16x16xf32, #tpu.memory_space<vmem>>, vector<16x16xf32>
    %c0_5 = arith.constant 0 : index
    %c0_6 = arith.constant 0 : index
    %5 = vector.load %arg4[%c0_5, %c0_6] : memref<64x64xbf16, #tpu.memory_space<vmem>>, vector<64x64xbf16>
    %cst_7 = arith.constant 0.000000e+00 : f32
    %6 = vector.broadcast %cst_7 : f32 to vector<16x64xf32>
    %7 = vector.extract_strided_slice %3 {offsets = [0, 0], sizes = [16, 16], strides = [1, 1]} : vector<32x192xf32> to vector<16x16xf32>
    %8 = arith.truncf %7 : vector<16x16xf32> to vector<16x16xbf16>
    %9 = vector.extract_strided_slice %3 {offsets = [0, 64], sizes = [16, 16], strides = [1, 1]} : vector<32x192xf32> to vector<16x16xf32>
    %10 = arith.truncf %9 : vector<16x16xf32> to vector<16x16xbf16>
    %11 = vector.extract_strided_slice %3 {offsets = [0, 128], sizes = [16, 16], strides = [1, 1]} : vector<32x192xf32> to vector<16x16xf32>
    %12 = arith.truncf %11 : vector<16x16xf32> to vector<16x16xbf16>
    %cst_8 = arith.constant dense<0.000000e+00> : vector<16x16xf32>
    %13 = tpu.matmul %8, %10, %cst_8 {dimension_numbers = #tpu.dot_dimension_numbers<[1], [1], [0], [0], [0, 0, 1, 0], [], []>} : vector<16x16xbf16>, vector<16x16xbf16>, vector<16x16xf32> -> vector<16x16xf32>
    %14 = arith.addf %13, %4 : vector<16x16xf32>
    %cst_9 = arith.constant dense<0xFF800000> : vector<16xf32>
    %15 = vector.multi_reduction <maximumf>, %14, %cst_9 [1] : vector<16x16xf32> to vector<16xf32>
    %16 = vector.shape_cast %15 : vector<16xf32> to vector<16x1xf32>
    %17 = vector.broadcast %16 : vector<16x1xf32> to vector<16x16xf32>
    %18 = arith.subf %14, %17 : vector<16x16xf32>
    %19 = math.exp %18 : vector<16x16xf32>
    %cst_10 = arith.constant dense<0.000000e+00> : vector<16xf32>
    %20 = vector.multi_reduction <add>, %19, %cst_10 [1] : vector<16x16xf32> to vector<16xf32>
    %21 = vector.shape_cast %20 : vector<16xf32> to vector<16x1xf32>
    %22 = tpu.reciprocal %21 {approx = true} : vector<16x1xf32> -> vector<16x1xf32>
    %23 = vector.broadcast %22 : vector<16x1xf32> to vector<16x16xf32>
    %24 = arith.mulf %19, %23 : vector<16x16xf32>
    %25 = arith.truncf %24 : vector<16x16xf32> to vector<16x16xbf16>
    %cst_11 = arith.constant dense<0.000000e+00> : vector<16x16xf32>
    %26 = tpu.matmul %25, %12, %cst_11 {dimension_numbers = #tpu.dot_dimension_numbers<[1], [0], [0], [1], [0, 0, 1, 1], [], []>} : vector<16x16xbf16>, vector<16x16xbf16>, vector<16x16xf32> -> vector<16x16xf32>
    %27 = arith.truncf %26 : vector<16x16xf32> to vector<16x16xbf16>
    %28 = vector.extract_strided_slice %5 {offsets = [0, 0], sizes = [16, 64], strides = [1, 1]} : vector<64x64xbf16> to vector<16x64xbf16>
    %cst_12 = arith.constant dense<0.000000e+00> : vector<16x64xf32>
    %29 = tpu.matmul %27, %28, %cst_12 {dimension_numbers = #tpu.dot_dimension_numbers<[1], [0], [0], [1], [0, 0, 1, 1], [], []>} : vector<16x16xbf16>, vector<16x64xbf16>, vector<16x64xf32> -> vector<16x64xf32>
    %30 = arith.addf %6, %29 : vector<16x64xf32>
    %31 = vector.extract_strided_slice %3 {offsets = [0, 16], sizes = [16, 16], strides = [1, 1]} : vector<32x192xf32> to vector<16x16xf32>
    %32 = arith.truncf %31 : vector<16x16xf32> to vector<16x16xbf16>
    %33 = vector.extract_strided_slice %3 {offsets = [0, 80], sizes = [16, 16], strides = [1, 1]} : vector<32x192xf32> to vector<16x16xf32>
    %34 = arith.truncf %33 : vector<16x16xf32> to vector<16x16xbf16>
    %35 = vector.extract_strided_slice %3 {offsets = [0, 144], sizes = [16, 16], strides = [1, 1]} : vector<32x192xf32> to vector<16x16xf32>
    %36 = arith.truncf %35 : vector<16x16xf32> to vector<16x16xbf16>
    %cst_13 = arith.constant dense<0.000000e+00> : vector<16x16xf32>
    %37 = tpu.matmul %32, %34, %cst_13 {dimension_numbers = #tpu.dot_dimension_numbers<[1], [1], [0], [0], [0, 0, 1, 0], [], []>} : vector<16x16xbf16>, vector<16x16xbf16>, vector<16x16xf32> -> vector<16x16xf32>
    %38 = arith.addf %37, %4 : vector<16x16xf32>
    %cst_14 = arith.constant dense<0xFF800000> : vector<16xf32>
    %39 = vector.multi_reduction <maximumf>, %38, %cst_14 [1] : vector<16x16xf32> to vector<16xf32>
    %40 = vector.shape_cast %39 : vector<16xf32> to vector<16x1xf32>
    %41 = vector.broadcast %40 : vector<16x1xf32> to vector<16x16xf32>
    %42 = arith.subf %38, %41 : vector<16x16xf32>
    %43 = math.exp %42 : vector<16x16xf32>
    %cst_15 = arith.constant dense<0.000000e+00> : vector<16xf32>
    %44 = vector.multi_reduction <add>, %43, %cst_15 [1] : vector<16x16xf32> to vector<16xf32>
    %45 = vector.shape_cast %44 : vector<16xf32> to vector<16x1xf32>
    %46 = tpu.reciprocal %45 {approx = true} : vector<16x1xf32> -> vector<16x1xf32>
    %47 = vector.broadcast %46 : vector<16x1xf32> to vector<16x16xf32>
    %48 = arith.mulf %43, %47 : vector<16x16xf32>
    %49 = arith.truncf %48 : vector<16x16xf32> to vector<16x16xbf16>
    %cst_16 = arith.constant dense<0.000000e+00> : vector<16x16xf32>
    %50 = tpu.matmul %49, %36, %cst_16 {dimension_numbers = #tpu.dot_dimension_numbers<[1], [0], [0], [1], [0, 0, 1, 1], [], []>} : vector<16x16xbf16>, vector<16x16xbf16>, vector<16x16xf32> -> vector<16x16xf32>
    %51 = arith.truncf %50 : vector<16x16xf32> to vector<16x16xbf16>
    %52 = vector.extract_strided_slice %5 {offsets = [16, 0], sizes = [16, 64], strides = [1, 1]} : vector<64x64xbf16> to vector<16x64xbf16>
    %cst_17 = arith.constant dense<0.000000e+00> : vector<16x64xf32>
    %53 = tpu.matmul %51, %52, %cst_17 {dimension_numbers = #tpu.dot_dimension_numbers<[1], [0], [0], [1], [0, 0, 1, 1], [], []>} : vector<16x16xbf16>, vector<16x64xbf16>, vector<16x64xf32> -> vector<16x64xf32>
    %54 = arith.addf %30, %53 : vector<16x64xf32>
    %55 = vector.extract_strided_slice %3 {offsets = [0, 32], sizes = [16, 16], strides = [1, 1]} : vector<32x192xf32> to vector<16x16xf32>
    %56 = arith.truncf %55 : vector<16x16xf32> to vector<16x16xbf16>
    %57 = vector.extract_strided_slice %3 {offsets = [0, 96], sizes = [16, 16], strides = [1, 1]} : vector<32x192xf32> to vector<16x16xf32>
    %58 = arith.truncf %57 : vector<16x16xf32> to vector<16x16xbf16>
    %59 = vector.extract_strided_slice %3 {offsets = [0, 160], sizes = [16, 16], strides = [1, 1]} : vector<32x192xf32> to vector<16x16xf32>
    %60 = arith.truncf %59 : vector<16x16xf32> to vector<16x16xbf16>
    %cst_18 = arith.constant dense<0.000000e+00> : vector<16x16xf32>
    %61 = tpu.matmul %56, %58, %cst_18 {dimension_numbers = #tpu.dot_dimension_numbers<[1], [1], [0], [0], [0, 0, 1, 0], [], []>} : vector<16x16xbf16>, vector<16x16xbf16>, vector<16x16xf32> -> vector<16x16xf32>
    %62 = arith.addf %61, %4 : vector<16x16xf32>
    %cst_19 = arith.constant dense<0xFF800000> : vector<16xf32>
    %63 = vector.multi_reduction <maximumf>, %62, %cst_19 [1] : vector<16x16xf32> to vector<16xf32>
    %64 = vector.shape_cast %63 : vector<16xf32> to vector<16x1xf32>
    %65 = vector.broadcast %64 : vector<16x1xf32> to vector<16x16xf32>
    %66 = arith.subf %62, %65 : vector<16x16xf32>
    %67 = math.exp %66 : vector<16x16xf32>
    %cst_20 = arith.constant dense<0.000000e+00> : vector<16xf32>
    %68 = vector.multi_reduction <add>, %67, %cst_20 [1] : vector<16x16xf32> to vector<16xf32>
    %69 = vector.shape_cast %68 : vector<16xf32> to vector<16x1xf32>
    %70 = tpu.reciprocal %69 {approx = true} : vector<16x1xf32> -> vector<16x1xf32>
    %71 = vector.broadcast %70 : vector<16x1xf32> to vector<16x16xf32>
    %72 = arith.mulf %67, %71 : vector<16x16xf32>
    %73 = arith.truncf %72 : vector<16x16xf32> to vector<16x16xbf16>
    %cst_21 = arith.constant dense<0.000000e+00> : vector<16x16xf32>
    %74 = tpu.matmul %73, %60, %cst_21 {dimension_numbers = #tpu.dot_dimension_numbers<[1], [0], [0], [1], [0, 0, 1, 1], [], []>} : vector<16x16xbf16>, vector<16x16xbf16>, vector<16x16xf32> -> vector<16x16xf32>
    %75 = arith.truncf %74 : vector<16x16xf32> to vector<16x16xbf16>
    %76 = vector.extract_strided_slice %5 {offsets = [32, 0], sizes = [16, 64], strides = [1, 1]} : vector<64x64xbf16> to vector<16x64xbf16>
    %cst_22 = arith.constant dense<0.000000e+00> : vector<16x64xf32>
    %77 = tpu.matmul %75, %76, %cst_22 {dimension_numbers = #tpu.dot_dimension_numbers<[1], [0], [0], [1], [0, 0, 1, 1], [], []>} : vector<16x16xbf16>, vector<16x64xbf16>, vector<16x64xf32> -> vector<16x64xf32>
    %78 = arith.addf %54, %77 : vector<16x64xf32>
    %79 = vector.extract_strided_slice %3 {offsets = [0, 48], sizes = [16, 16], strides = [1, 1]} : vector<32x192xf32> to vector<16x16xf32>
    %80 = arith.truncf %79 : vector<16x16xf32> to vector<16x16xbf16>
    %81 = vector.extract_strided_slice %3 {offsets = [0, 112], sizes = [16, 16], strides = [1, 1]} : vector<32x192xf32> to vector<16x16xf32>
    %82 = arith.truncf %81 : vector<16x16xf32> to vector<16x16xbf16>
    %83 = vector.extract_strided_slice %3 {offsets = [0, 176], sizes = [16, 16], strides = [1, 1]} : vector<32x192xf32> to vector<16x16xf32>
    %84 = arith.truncf %83 : vector<16x16xf32> to vector<16x16xbf16>
    %cst_23 = arith.constant dense<0.000000e+00> : vector<16x16xf32>
    %85 = tpu.matmul %80, %82, %cst_23 {dimension_numbers = #tpu.dot_dimension_numbers<[1], [1], [0], [0], [0, 0, 1, 0], [], []>} : vector<16x16xbf16>, vector<16x16xbf16>, vector<16x16xf32> -> vector<16x16xf32>
    %86 = arith.addf %85, %4 : vector<16x16xf32>
    %cst_24 = arith.constant dense<0xFF800000> : vector<16xf32>
    %87 = vector.multi_reduction <maximumf>, %86, %cst_24 [1] : vector<16x16xf32> to vector<16xf32>
    %88 = vector.shape_cast %87 : vector<16xf32> to vector<16x1xf32>
    %89 = vector.broadcast %88 : vector<16x1xf32> to vector<16x16xf32>
    %90 = arith.subf %86, %89 : vector<16x16xf32>
    %91 = math.exp %90 : vector<16x16xf32>
    %cst_25 = arith.constant dense<0.000000e+00> : vector<16xf32>
    %92 = vector.multi_reduction <add>, %91, %cst_25 [1] : vector<16x16xf32> to vector<16xf32>
    %93 = vector.shape_cast %92 : vector<16xf32> to vector<16x1xf32>
    %94 = tpu.reciprocal %93 {approx = true} : vector<16x1xf32> -> vector<16x1xf32>
    %95 = vector.broadcast %94 : vector<16x1xf32> to vector<16x16xf32>
    %96 = arith.mulf %91, %95 : vector<16x16xf32>
    %97 = arith.truncf %96 : vector<16x16xf32> to vector<16x16xbf16>
    %cst_26 = arith.constant dense<0.000000e+00> : vector<16x16xf32>
    %98 = tpu.matmul %97, %84, %cst_26 {dimension_numbers = #tpu.dot_dimension_numbers<[1], [0], [0], [1], [0, 0, 1, 1], [], []>} : vector<16x16xbf16>, vector<16x16xbf16>, vector<16x16xf32> -> vector<16x16xf32>
    %99 = arith.truncf %98 : vector<16x16xf32> to vector<16x16xbf16>
    %100 = vector.extract_strided_slice %5 {offsets = [48, 0], sizes = [16, 64], strides = [1, 1]} : vector<64x64xbf16> to vector<16x64xbf16>
    %cst_27 = arith.constant dense<0.000000e+00> : vector<16x64xf32>
    %101 = tpu.matmul %99, %100, %cst_27 {dimension_numbers = #tpu.dot_dimension_numbers<[1], [0], [0], [1], [0, 0, 1, 1], [], []>} : vector<16x16xbf16>, vector<16x64xbf16>, vector<16x64xf32> -> vector<16x64xf32>
    %102 = arith.addf %78, %101 : vector<16x64xf32>
    %cst_28 = arith.constant 0.000000e+00 : f32
    %103 = vector.broadcast %cst_28 : f32 to vector<16x64xf32>
    %104 = vector.extract_strided_slice %3 {offsets = [16, 0], sizes = [16, 16], strides = [1, 1]} : vector<32x192xf32> to vector<16x16xf32>
    %105 = arith.truncf %104 : vector<16x16xf32> to vector<16x16xbf16>
    %106 = vector.extract_strided_slice %3 {offsets = [16, 64], sizes = [16, 16], strides = [1, 1]} : vector<32x192xf32> to vector<16x16xf32>
    %107 = arith.truncf %106 : vector<16x16xf32> to vector<16x16xbf16>
    %108 = vector.extract_strided_slice %3 {offsets = [16, 128], sizes = [16, 16], strides = [1, 1]} : vector<32x192xf32> to vector<16x16xf32>
    %109 = arith.truncf %108 : vector<16x16xf32> to vector<16x16xbf16>
    %cst_29 = arith.constant dense<0.000000e+00> : vector<16x16xf32>
    %110 = tpu.matmul %105, %107, %cst_29 {dimension_numbers = #tpu.dot_dimension_numbers<[1], [1], [0], [0], [0, 0, 1, 0], [], []>} : vector<16x16xbf16>, vector<16x16xbf16>, vector<16x16xf32> -> vector<16x16xf32>
    %111 = arith.addf %110, %4 : vector<16x16xf32>
    %cst_30 = arith.constant dense<0xFF800000> : vector<16xf32>
    %112 = vector.multi_reduction <maximumf>, %111, %cst_30 [1] : vector<16x16xf32> to vector<16xf32>
    %113 = vector.shape_cast %112 : vector<16xf32> to vector<16x1xf32>
    %114 = vector.broadcast %113 : vector<16x1xf32> to vector<16x16xf32>
    %115 = arith.subf %111, %114 : vector<16x16xf32>
    %116 = math.exp %115 : vector<16x16xf32>
    %cst_31 = arith.constant dense<0.000000e+00> : vector<16xf32>
    %117 = vector.multi_reduction <add>, %116, %cst_31 [1] : vector<16x16xf32> to vector<16xf32>
    %118 = vector.shape_cast %117 : vector<16xf32> to vector<16x1xf32>
    %119 = tpu.reciprocal %118 {approx = true} : vector<16x1xf32> -> vector<16x1xf32>
    %120 = vector.broadcast %119 : vector<16x1xf32> to vector<16x16xf32>
    %121 = arith.mulf %116, %120 : vector<16x16xf32>
    %122 = arith.truncf %121 : vector<16x16xf32> to vector<16x16xbf16>
    %cst_32 = arith.constant dense<0.000000e+00> : vector<16x16xf32>
    %123 = tpu.matmul %122, %109, %cst_32 {dimension_numbers = #tpu.dot_dimension_numbers<[1], [0], [0], [1], [0, 0, 1, 1], [], []>} : vector<16x16xbf16>, vector<16x16xbf16>, vector<16x16xf32> -> vector<16x16xf32>
    %124 = arith.truncf %123 : vector<16x16xf32> to vector<16x16xbf16>
    %125 = vector.extract_strided_slice %5 {offsets = [0, 0], sizes = [16, 64], strides = [1, 1]} : vector<64x64xbf16> to vector<16x64xbf16>
    %cst_33 = arith.constant dense<0.000000e+00> : vector<16x64xf32>
    %126 = tpu.matmul %124, %125, %cst_33 {dimension_numbers = #tpu.dot_dimension_numbers<[1], [0], [0], [1], [0, 0, 1, 1], [], []>} : vector<16x16xbf16>, vector<16x64xbf16>, vector<16x64xf32> -> vector<16x64xf32>
    %127 = arith.addf %103, %126 : vector<16x64xf32>
    %128 = vector.extract_strided_slice %3 {offsets = [16, 16], sizes = [16, 16], strides = [1, 1]} : vector<32x192xf32> to vector<16x16xf32>
    %129 = arith.truncf %128 : vector<16x16xf32> to vector<16x16xbf16>
    %130 = vector.extract_strided_slice %3 {offsets = [16, 80], sizes = [16, 16], strides = [1, 1]} : vector<32x192xf32> to vector<16x16xf32>
    %131 = arith.truncf %130 : vector<16x16xf32> to vector<16x16xbf16>
    %132 = vector.extract_strided_slice %3 {offsets = [16, 144], sizes = [16, 16], strides = [1, 1]} : vector<32x192xf32> to vector<16x16xf32>
    %133 = arith.truncf %132 : vector<16x16xf32> to vector<16x16xbf16>
    %cst_34 = arith.constant dense<0.000000e+00> : vector<16x16xf32>
    %134 = tpu.matmul %129, %131, %cst_34 {dimension_numbers = #tpu.dot_dimension_numbers<[1], [1], [0], [0], [0, 0, 1, 0], [], []>} : vector<16x16xbf16>, vector<16x16xbf16>, vector<16x16xf32> -> vector<16x16xf32>
    %135 = arith.addf %134, %4 : vector<16x16xf32>
    %cst_35 = arith.constant dense<0xFF800000> : vector<16xf32>
    %136 = vector.multi_reduction <maximumf>, %135, %cst_35 [1] : vector<16x16xf32> to vector<16xf32>
    %137 = vector.shape_cast %136 : vector<16xf32> to vector<16x1xf32>
    %138 = vector.broadcast %137 : vector<16x1xf32> to vector<16x16xf32>
    %139 = arith.subf %135, %138 : vector<16x16xf32>
    %140 = math.exp %139 : vector<16x16xf32>
    %cst_36 = arith.constant dense<0.000000e+00> : vector<16xf32>
    %141 = vector.multi_reduction <add>, %140, %cst_36 [1] : vector<16x16xf32> to vector<16xf32>
    %142 = vector.shape_cast %141 : vector<16xf32> to vector<16x1xf32>
    %143 = tpu.reciprocal %142 {approx = true} : vector<16x1xf32> -> vector<16x1xf32>
    %144 = vector.broadcast %143 : vector<16x1xf32> to vector<16x16xf32>
    %145 = arith.mulf %140, %144 : vector<16x16xf32>
    %146 = arith.truncf %145 : vector<16x16xf32> to vector<16x16xbf16>
    %cst_37 = arith.constant dense<0.000000e+00> : vector<16x16xf32>
    %147 = tpu.matmul %146, %133, %cst_37 {dimension_numbers = #tpu.dot_dimension_numbers<[1], [0], [0], [1], [0, 0, 1, 1], [], []>} : vector<16x16xbf16>, vector<16x16xbf16>, vector<16x16xf32> -> vector<16x16xf32>
    %148 = arith.truncf %147 : vector<16x16xf32> to vector<16x16xbf16>
    %149 = vector.extract_strided_slice %5 {offsets = [16, 0], sizes = [16, 64], strides = [1, 1]} : vector<64x64xbf16> to vector<16x64xbf16>
    %cst_38 = arith.constant dense<0.000000e+00> : vector<16x64xf32>
    %150 = tpu.matmul %148, %149, %cst_38 {dimension_numbers = #tpu.dot_dimension_numbers<[1], [0], [0], [1], [0, 0, 1, 1], [], []>} : vector<16x16xbf16>, vector<16x64xbf16>, vector<16x64xf32> -> vector<16x64xf32>
    %151 = arith.addf %127, %150 : vector<16x64xf32>
    %152 = vector.extract_strided_slice %3 {offsets = [16, 32], sizes = [16, 16], strides = [1, 1]} : vector<32x192xf32> to vector<16x16xf32>
    %153 = arith.truncf %152 : vector<16x16xf32> to vector<16x16xbf16>
    %154 = vector.extract_strided_slice %3 {offsets = [16, 96], sizes = [16, 16], strides = [1, 1]} : vector<32x192xf32> to vector<16x16xf32>
    %155 = arith.truncf %154 : vector<16x16xf32> to vector<16x16xbf16>
    %156 = vector.extract_strided_slice %3 {offsets = [16, 160], sizes = [16, 16], strides = [1, 1]} : vector<32x192xf32> to vector<16x16xf32>
    %157 = arith.truncf %156 : vector<16x16xf32> to vector<16x16xbf16>
    %cst_39 = arith.constant dense<0.000000e+00> : vector<16x16xf32>
    %158 = tpu.matmul %153, %155, %cst_39 {dimension_numbers = #tpu.dot_dimension_numbers<[1], [1], [0], [0], [0, 0, 1, 0], [], []>} : vector<16x16xbf16>, vector<16x16xbf16>, vector<16x16xf32> -> vector<16x16xf32>
    %159 = arith.addf %158, %4 : vector<16x16xf32>
    %cst_40 = arith.constant dense<0xFF800000> : vector<16xf32>
    %160 = vector.multi_reduction <maximumf>, %159, %cst_40 [1] : vector<16x16xf32> to vector<16xf32>
    %161 = vector.shape_cast %160 : vector<16xf32> to vector<16x1xf32>
    %162 = vector.broadcast %161 : vector<16x1xf32> to vector<16x16xf32>
    %163 = arith.subf %159, %162 : vector<16x16xf32>
    %164 = math.exp %163 : vector<16x16xf32>
    %cst_41 = arith.constant dense<0.000000e+00> : vector<16xf32>
    %165 = vector.multi_reduction <add>, %164, %cst_41 [1] : vector<16x16xf32> to vector<16xf32>
    %166 = vector.shape_cast %165 : vector<16xf32> to vector<16x1xf32>
    %167 = tpu.reciprocal %166 {approx = true} : vector<16x1xf32> -> vector<16x1xf32>
    %168 = vector.broadcast %167 : vector<16x1xf32> to vector<16x16xf32>
    %169 = arith.mulf %164, %168 : vector<16x16xf32>
    %170 = arith.truncf %169 : vector<16x16xf32> to vector<16x16xbf16>
    %cst_42 = arith.constant dense<0.000000e+00> : vector<16x16xf32>
    %171 = tpu.matmul %170, %157, %cst_42 {dimension_numbers = #tpu.dot_dimension_numbers<[1], [0], [0], [1], [0, 0, 1, 1], [], []>} : vector<16x16xbf16>, vector<16x16xbf16>, vector<16x16xf32> -> vector<16x16xf32>
    %172 = arith.truncf %171 : vector<16x16xf32> to vector<16x16xbf16>
    %173 = vector.extract_strided_slice %5 {offsets = [32, 0], sizes = [16, 64], strides = [1, 1]} : vector<64x64xbf16> to vector<16x64xbf16>
    %cst_43 = arith.constant dense<0.000000e+00> : vector<16x64xf32>
    %174 = tpu.matmul %172, %173, %cst_43 {dimension_numbers = #tpu.dot_dimension_numbers<[1], [0], [0], [1], [0, 0, 1, 1], [], []>} : vector<16x16xbf16>, vector<16x64xbf16>, vector<16x64xf32> -> vector<16x64xf32>
    %175 = arith.addf %151, %174 : vector<16x64xf32>
    %176 = vector.extract_strided_slice %3 {offsets = [16, 48], sizes = [16, 16], strides = [1, 1]} : vector<32x192xf32> to vector<16x16xf32>
    %177 = arith.truncf %176 : vector<16x16xf32> to vector<16x16xbf16>
    %178 = vector.extract_strided_slice %3 {offsets = [16, 112], sizes = [16, 16], strides = [1, 1]} : vector<32x192xf32> to vector<16x16xf32>
    %179 = arith.truncf %178 : vector<16x16xf32> to vector<16x16xbf16>
    %180 = vector.extract_strided_slice %3 {offsets = [16, 176], sizes = [16, 16], strides = [1, 1]} : vector<32x192xf32> to vector<16x16xf32>
    %181 = arith.truncf %180 : vector<16x16xf32> to vector<16x16xbf16>
    %cst_44 = arith.constant dense<0.000000e+00> : vector<16x16xf32>
    %182 = tpu.matmul %177, %179, %cst_44 {dimension_numbers = #tpu.dot_dimension_numbers<[1], [1], [0], [0], [0, 0, 1, 0], [], []>} : vector<16x16xbf16>, vector<16x16xbf16>, vector<16x16xf32> -> vector<16x16xf32>
    %183 = arith.addf %182, %4 : vector<16x16xf32>
    %cst_45 = arith.constant dense<0xFF800000> : vector<16xf32>
    %184 = vector.multi_reduction <maximumf>, %183, %cst_45 [1] : vector<16x16xf32> to vector<16xf32>
    %185 = vector.shape_cast %184 : vector<16xf32> to vector<16x1xf32>
    %186 = vector.broadcast %185 : vector<16x1xf32> to vector<16x16xf32>
    %187 = arith.subf %183, %186 : vector<16x16xf32>
    %188 = math.exp %187 : vector<16x16xf32>
    %cst_46 = arith.constant dense<0.000000e+00> : vector<16xf32>
    %189 = vector.multi_reduction <add>, %188, %cst_46 [1] : vector<16x16xf32> to vector<16xf32>
    %190 = vector.shape_cast %189 : vector<16xf32> to vector<16x1xf32>
    %191 = tpu.reciprocal %190 {approx = true} : vector<16x1xf32> -> vector<16x1xf32>
    %192 = vector.broadcast %191 : vector<16x1xf32> to vector<16x16xf32>
    %193 = arith.mulf %188, %192 : vector<16x16xf32>
    %194 = arith.truncf %193 : vector<16x16xf32> to vector<16x16xbf16>
    %cst_47 = arith.constant dense<0.000000e+00> : vector<16x16xf32>
    %195 = tpu.matmul %194, %181, %cst_47 {dimension_numbers = #tpu.dot_dimension_numbers<[1], [0], [0], [1], [0, 0, 1, 1], [], []>} : vector<16x16xbf16>, vector<16x16xbf16>, vector<16x16xf32> -> vector<16x16xf32>
    %196 = arith.truncf %195 : vector<16x16xf32> to vector<16x16xbf16>
    %197 = vector.extract_strided_slice %5 {offsets = [48, 0], sizes = [16, 64], strides = [1, 1]} : vector<64x64xbf16> to vector<16x64xbf16>
    %cst_48 = arith.constant dense<0.000000e+00> : vector<16x64xf32>
    %198 = tpu.matmul %196, %197, %cst_48 {dimension_numbers = #tpu.dot_dimension_numbers<[1], [0], [0], [1], [0, 0, 1, 1], [], []>} : vector<16x16xbf16>, vector<16x64xbf16>, vector<16x64xf32> -> vector<16x64xf32>
    %199 = arith.addf %175, %198 : vector<16x64xf32>
    %200 = tpu.concatenate %102, %199 in 0 : vector<16x64xf32>, vector<16x64xf32> -> vector<32x64xf32>
    %c0_49 = arith.constant 0 : index
    %c0_50 = arith.constant 0 : index
    %201 = vector.load %arg5[%c0_49, %c0_50] : memref<1x64xf32, #tpu.memory_space<vmem>>, vector<1x64xf32>
    %202 = vector.broadcast %201 : vector<1x64xf32> to vector<32x64xf32>
    %203 = arith.addf %200, %202 : vector<32x64xf32>
    %204 = arith.addf %203, %0 : vector<32x64xf32>
    %cst_51 = arith.constant 0.000000e+00 : f32
    %205 = vector.broadcast %cst_51 : f32 to vector<32x64xf32>
    %206 = tpu.concatenate %204, %205 in 1 : vector<32x64xf32>, vector<32x64xf32> -> vector<32x128xf32>
    %c0_52 = arith.constant 0 : index
    %c0_53 = arith.constant 0 : index
    %207 = vector.load %arg6[%c0_52, %c0_53] : memref<32x128xf32, #tpu.memory_space<vmem>>, vector<32x128xf32>
    tpu.vector_store %arg6[%c0_52, %c0_53], %206 {strides = array<i32>} : memref<32x128xf32, #tpu.memory_space<vmem>>, vector<32x128xf32>,
    return
  }
  func.func @transform_0(%arg0: i32) -> (i32, i32) {
    %c0_i32 = arith.constant 0 : i32
    %c0_i32_0 = arith.constant 0 : i32
    %c0_i32_1 = arith.constant 0 : i32
    return %c0_i32, %c0_i32_0 : i32, i32
  }
  func.func @transform_1(%arg0: i32) -> (i32, i32) {
    %c0_i32 = arith.constant 0 : i32
    %c0_i32_0 = arith.constant 0 : i32
    %c0_i32_1 = arith.constant 0 : i32
    return %c0_i32, %c0_i32_0 : i32, i32
  }
  func.func @transform_2(%arg0: i32) -> (i32, i32) {
    %c0_i32 = arith.constant 0 : i32
    %c0_i32_0 = arith.constant 0 : i32
    %c0_i32_1 = arith.constant 0 : i32
    return %c0_i32, %c0_i32_0 : i32, i32
  }
  func.func @transform_3(%arg0: i32) -> (i32, i32) {
    %c0_i32 = arith.constant 0 : i32
    %c0_i32_0 = arith.constant 0 : i32
    %c0_i32_1 = arith.constant 0 : i32
    return %c0_i32, %c0_i32_0 : i32, i32
  }
  func.func @transform_4(%arg0: i32) -> (i32, i32) {
    %c0_i32 = arith.constant 0 : i32
    %c0_i32_0 = arith.constant 0 : i32
    %c0_i32_1 = arith.constant 0 : i32
    return %c0_i32, %c0_i32_0 : i32, i32
  }
  func.func @transform_5(%arg0: i32) -> (i32, i32) {
    %c0_i32 = arith.constant 0 : i32
    %c0_i32_0 = arith.constant 0 : i32
    %c0_i32_1 = arith.constant 0 : i32
    return %c0_i32, %c0_i32_0 : i32, i32
  }
}

</mosaic_0001>

<bundles_post_ra>
// kernel: attention_forward.1
= control target key start
LH: loop header
LB: loop body
LE: loop exit
PB: predicated region body
PF: predicated region fallthrough
CT: control target
= control target key end

     0   :  { %v1892_v2 = vmov 0   ;;  %s2274_s0 = inlined_call_operand.vmem [shape: f32[32,64], index: 0, kind: input, shape index: {}]   ;;  %s2275_s1 = inlined_call_operand.vmem [shape: f32[16,16], index: 1, kind: input, shape index: {}]   ;;  %s2276_s2 = inlined_call_operand.vmem [shape: bf16[64,192], index: 2, kind: input, shape index: {}]   ;;  %s2277_s3 = inlined_call_operand.vmem [shape: bf16[64,64], index: 3, kind: input, shape index: {}]   ;;  %s2278_s4 = inlined_call_operand.vmem [shape: f32[1,64], index: 4, kind: input, shape index: {}]   ;;  %s2279_s5 = inlined_call_operand.hbm [shape: f32[32,128], index: 5, kind: output, shape index: {}]  }
   0x1   :  { %v1788_v0 = vld [vmem:[%s2276_s2 + $0x4] ss:$8 sps:$4 sm:$0xff]   ;;  %v1790_v1 = vld [vmem:[%s2276_s2] ss:$8 sps:$4 sm:$0xff]   ;;  %115 = vmatprep.mubr.bf16.mxu0 %v1892_v2  ;;  %v1791_v3 = vld [vmem:[%s2276_s2 + $0x14] ss:$8 sps:$4 sm:$0xff]  }
   0x2   :  { %83 = vmatprep.subr.bf16.mxu0 %v1788_v0  ;;  %v1793_v4 = vld [vmem:[%s2276_s2 + $0x10] ss:$8 sps:$4 sm:$0xff]   ;;  %v1794_v5 = vld [vmem:[%s2276_s2 + $0x24] ss:$8 sps:$4 sm:$0xff]   ;;  %v1796_v6 = vld [vmem:[%s2276_s2 + $0x20] ss:$8 sps:$4 sm:$0xff]  }
   0x3   :  { %84 = vmatpush1.bf16.msra.mxu0 %v1790_v1  ;;  %v1797_v7 = vld [vmem:[%s2276_s2 + $0x34] ss:$8 sps:$4 sm:$0xff]  }
   0x4   :  { %85 = vmatprep.subr.bf16.mxu0 %v1791_v3 }
   0x7   :  { %86 = vmatpush1.bf16.msra.mxu0 %v1793_v4 }
   0x8   :  { %87 = vmatprep.subr.bf16.mxu0 %v1794_v5 }
   0x9   :  { %10 = vsyncpa [#allocation3], 0  ;;  %v1799_v8 = vld [vmem:[%s2276_s2 + $0x30] ss:$8 sps:$4 sm:$0xff]   ;;  %v1962_v9 = vld [vmem:[%s2274_s0] sm:$0xff]  ;;  %vm76_vm0 = vcmask 523264  }
   0xa   :  { %v1967_v10 = vld [vmem:[%s2274_s0 + $0x8] sm:$0xff]  ;;  %v1893_v12 = vmov 0.0   ;;  %vm1894_vm1 = vmmov 0   ;;  %s1895_s2 = smov 64   ;;  %vm151_vm2 = vcmask 130048   ;;  %v1993_v21 = vld [vmem:[%s2275_s1] sm:$0xff] }
   0xb   :  { %88 = vmatpush1.bf16.msra.mxu0 %v1796_v6  ;;  %v26_v11 = vpack.c.bf16 %v1967_v10, %v1962_v9  ;;  %1631 = vmatprep.subr.bf16.mxu1 %v1893_v12  ;;  %v1998_v23 = vld [vmem:[%s2275_s1 + $0x8] sm:$0xff]  ;;  %s1896_s1 = smov 48   ;;  %s1897_s17 = smov 112  }
   0xc   :  { %89 = vmatprep.subr.bf16.mxu0 %v1797_v7  ;;  %1633 = vmatprep.mubr.msk.bf16.mxu1 %vm1894_vm1, %v1893_v12  ;;  %s1898_s18 = smov 96   ;;  %s1899_s23 = smov 32  }
   0xd   :  { %s1900_s27 = smov 16   ;;  %s1901_s28 = smov 80  }
   0xf   :  { %90 = vmatpush1.bf16.msra.mxu0 %v1799_v8 }
  0x10   :  { %1649 = vmatprep.subr.bf16.mxu0 %v1893_v12 }
  0x12   :  { %1552 = vmatmul.mubr.msk.bf16.vlgmr.msra.gmra.mrb[0].mxu0 %vm76_vm0, %v26_v11 }
  0x13   :  { %125 = vmatprep.mubr.bf16.mxu0 %v1892_v2 }
  0xe5   :  { %v117_v13 = vpop.f32.mrb[0].mxu0 }
  0xe6   :  { %v119_v14 = vpop.f32.mrb[1].mxu0 }
  0xe7   :  { %v121_v15 = vpop.f32.mrb[2].mxu0 }
  0xe8   :  { %v1976_v16 = vpack.c.bf16 %v121_v15, %v117_v13  ;;  %v123_v17 = vpop.f32.mrb[3].mxu0  ;;  %v2029_v13 = vld [vmem:[%s2274_s0 + $0x10] sm:$0xff] }
  0xe9   :  { %v1978_v18 = vpack.c.bf16 %v123_v17, %v119_v14  ;;  %v2034_v14 = vld [vmem:[%s2274_s0 + $0x18] sm:$0xff]  ;;  %v2048_v17 = vld [vmem:[%s2277_s3 + $0x8] sm:$0xff]  }
  0xea   :  { %149 = vrot.lane.b32.xlu0 %v1976_v16, %s1895_s2  ;;  %v27_v15 = vpack.c.bf16 %v2034_v14, %v2029_v13 }
  0xec   :  { %1553 = vmatmul.mubr.msk.bf16.gmra.mrb[4].mxu0 %vm76_vm0, %v27_v15 }
  0xed   :  { %1651 = vmatprep.mubr.msk.bf16.mxu0 %vm1894_vm1, %v1893_v12 }
 0x15c   :  { %v150_v19 = vpop.permute.xlu0 %149 }
 0x15d   :  { %v156_v20 = vsel %vm151_vm2, %v150_v19, 0 }
 0x15e   :  { %1632 = vmatpush3.bf16.xpose.msra.mxu1 %v156_v20 }
 0x15f   :  { %1637 = vmatprep.subr.bf16.mxu1 %v1893_v12 }
 0x165   :  { %1634 = vmatmul.mubr.msk.bf16.vlgmr.msra.gmra.mrb[0].mxu1 %vm151_vm2, %v1976_v16 }
 0x166   :  { %1638 = vmatpush3.bf16.msra.mxu1 %v1978_v18  ;;  %1639 = vmatprep.mubr.msk.bf16.mxu1 %vm1894_vm1, %v1893_v12 }
 0x167   :  { %1643 = vmatprep.subr.bf16.mxu1 %v1893_v12 }
 0x238   :  { %v192_v22 = vpop.f32.mrb[0].mxu1 }
 0x239   :  { %v193_v24 = vadd.f32 %v192_v22, %v1993_v21  ;;  %v1635_v25 = vpop.f32.mrb[1].mxu1 }
 0x23a   :  { %v195_v26 = vpop.f32.mrb[2].mxu1 }
 0x23b   :  { %v196_v27 = vadd.f32 %v195_v26, %v1998_v23  ;;  %v1636_v28 = vpop.f32.mrb[3].mxu1  ;;  %v199_v29 = vsel %vm151_vm2, %v193_v24, -inf }
 0x23c   :  { %200 = vmax.xlane.f32.xlu0 %v199_v29  ;;  %v2056_v28 = vld [vmem:[%s2277_s3] sm:$0xff]  }
 0x23d   :  { %v202_v30 = vsel %vm151_vm2, %v196_v27, -inf }
 0x23e   :  { %203 = vmax.xlane.f32.xlu1 %v202_v30  ;;  %v127_v30 = vpop.f32.mrb[4].mxu0 }
 0x2c9   :  { %v201_v31 = vpop.xlane.xlu0 %200 }
 0x2ca   :  { %v205_v32 = vsub.f32 %v193_v24, %v201_v31  ;;  %v129_v31 = vpop.f32.mrb[5].mxu0 }
 0x2cb   :  { %v204_v33 = vpop.xlane.xlu1 %203 }
 0x2cc   :  { %v207_v34 = vmul.f32 1.442695, %v205_v32  ;;  %v206_v35 = vsub.f32 %v196_v27, %v204_v33  ;;  %v131_v32 = vpop.f32.mrb[6].mxu0 }
 0x2cd   :  { %v2066_v33 = vpack.c.bf16 %v131_v32, %v127_v30 }
 0x2ce   :  { %1804 = vpow2.f32 %v207_v34  ;;  %v209_v36 = vmul.f32 1.442695, %v206_v35  ;;  %v133_v34 = vpop.f32.mrb[7].mxu0 }
 0x2cf   :  { %v2068_v35 = vpack.c.bf16 %v133_v34, %v129_v31 }
 0x2d0   :  { %1806 = vpow2.f32 %v209_v36 }
 0x2d8   :  { %v1805_v37 = vpop.eup %1804 }
 0x2d9   :  { %v211_v38 = vsel %vm151_vm2, %v1805_v37, 0.0 }
 0x2da   :  { %v1807_v39 = vpop.eup %1806  ;;  %212 = vadd.xlane.f32.xlu1 %v211_v38 }
 0x2db   :  { %v214_v40 = vsel %vm151_vm2, %v1807_v39, 0.0 }
 0x2de   :  { %215 = vadd.xlane.f32.xlu1 %v214_v40 }
 0x2ef   :  { %269 = vrot.lane.b32.xlu1 %v1976_v16, %s1896_s1 }
 0x2f3   :  { %267 = vrot.lane.b32.xlu1 %v1976_v16, %s1897_s17 }
 0x367   :  { %v213_v41 = vpop.xlane.xlu1 %212 }
 0x368   :  { %1808 = vrcp.f32 %v213_v41 }
 0x36b   :  { %v216_v42 = vpop.xlane.xlu1 %215 }
 0x36c   :  { %1810 = vrcp.f32 %v216_v42 }
 0x36f   :  { %v270_v47 = vpop.permute.xlu1 %269 }
 0x370   :  { %v275_v49 = vsel %vm151_vm2, %v270_v47, 0 }
 0x372   :  { %v1809_v43 = vpop.eup %1808 }
 0x373   :  { %v219_v45 = vmul.f32 %v1809_v43, %v1805_v37  ;;  %v268_v50 = vpop.permute.xlu1 %267 }
 0x376   :  { %v1811_v44 = vpop.eup %1810 }
 0x377   :  { %v220_v46 = vmul.f32 %v1811_v44, %v1807_v39 }
 0x379   :  { %v221_v48 = vpack.c.bf16 %v220_v46, %v219_v45 }
 0x37b   :  { %1640 = vmatmul.mubr.msk.bf16.vlgmr.msra.gmra.mrb[4].mxu1 %vm151_vm2, %v221_v48 }
 0x37c   :  { %1644 = vmatpush3.bf16.xpose.msra.mxu1 %v275_v49  ;;  %1645 = vmatprep.mubr.msk.bf16.mxu1 %vm1894_vm1, %v1893_v12 }
 0x37d   :  { %1655 = vmatprep.subr.bf16.mxu1 %v1893_v12 }
 0x383   :  { %1646 = vmatmul.mubr.msk.bf16.vlgmr.msra.gmra.mrb[8].mxu1 %vm151_vm2, %v268_v50 }
 0x384   :  { %1657 = vmatprep.mubr.msk.bf16.mxu1 %vm1894_vm1, %v1893_v12  ;;  %1656 = vmatpush3.bf16.msra.mxu1 %v2048_v17 }
 0x385   :  { %1667 = vmatprep.subr.bf16.mxu1 %v1893_v12 }
 0x44e   :  { %v259_v51 = vpop.f32.mrb[4].mxu1 }
 0x44f   :  { %v1641_v52 = vpop.f32.mrb[5].mxu1 }
 0x450   :  { %v262_v53 = vpop.f32.mrb[6].mxu1 }
 0x451   :  { %v266_v54 = vpack.c.bf16 %v262_v53, %v259_v51  ;;  %v1642_v55 = vpop.f32.mrb[7].mxu1 }
 0x456   :  { %v311_v56 = vpop.f32.mrb[8].mxu1 }
 0x457   :  { %v312_v57 = vadd.f32 %v311_v56, %v1993_v21  ;;  %v1647_v58 = vpop.f32.mrb[9].mxu1 }
 0x458   :  { %v314_v59 = vpop.f32.mrb[10].mxu1 }
 0x459   :  { %v315_v60 = vadd.f32 %v314_v59, %v1998_v23  ;;  %v1648_v61 = vpop.f32.mrb[11].mxu1  ;;  %v318_v62 = vsel %vm151_vm2, %v312_v57, -inf }
 0x45a   :  { %319 = vmax.xlane.f32.xlu1 %v318_v62 }
 0x45b   :  { %v321_v63 = vsel %vm151_vm2, %v315_v60, -inf }
 0x45c   :  { %322 = vmax.xlane.f32.xlu0 %v321_v63 }
 0x46b   :  { %490 = vrot.lane.b32.xlu1 %v1976_v16, %s1898_s18 }
 0x4e7   :  { %v320_v0 = vpop.xlane.xlu1 %319 }
 0x4e8   :  { %v324_v1 = vsub.f32 %v312_v57, %v320_v0 }
 0x4e9   :  { %v323_v2 = vpop.xlane.xlu0 %322 }
 0x4ea   :  { %v326_v3 = vmul.f32 1.442695, %v324_v1  ;;  %v325_v4 = vsub.f32 %v315_v60, %v323_v2 }
 0x4eb   :  { %v491_v47 = vpop.permute.xlu1 %490 }
 0x4ec   :  { %1812 = vpow2.f32 %v326_v3  ;;  %v328_v5 = vmul.f32 1.442695, %v325_v4 }
 0x4ee   :  { %1814 = vpow2.f32 %v328_v5 }
 0x4f6   :  { %v1813_v6 = vpop.eup %1812 }
 0x4f7   :  { %v330_v7 = vsel %vm151_vm2, %v1813_v6, 0.0 }
 0x4f8   :  { %v1815_v8 = vpop.eup %1814  ;;  %331 = vadd.xlane.f32.xlu0 %v330_v7 }
 0x4f9   :  { %v333_v11 = vsel %vm151_vm2, %v1815_v8, 0.0 }
 0x4fc   :  { %334 = vadd.xlane.f32.xlu0 %v333_v11 }
 0x512   :  { %342 = vrot.lane.b32.xlu0 %v1978_v18, %s1897_s17 }
 0x516   :  { %492 = vrot.lane.b32.xlu0 %v1976_v16, %s1899_s23 }
 0x585   :  { %v332_v19 = vpop.xlane.xlu0 %331 }
 0x586   :  { %1816 = vrcp.f32 %v332_v19 }
 0x589   :  { %v335_v20 = vpop.xlane.xlu0 %334 }
 0x58a   :  { %1818 = vrcp.f32 %v335_v20 }
 0x58d   :  { %v343_v22 = vpop.permute.xlu0 %342 }
 0x58e   :  { %1650 = vmatpush3.bf16.msra.mxu0 %v343_v22 }
 0x58f   :  { %1661 = vmatprep.subr.bf16.mxu0 %v1893_v12 }
 0x590   :  { %v1817_v24 = vpop.eup %1816 }
 0x591   :  { %v338_v26 = vmul.f32 %v1817_v24, %v1813_v6  ;;  %v493_v38 = vpop.permute.xlu0 %492 }
 0x592   :  { %v498_v42 = vsel %vm151_vm2, %v493_v38, 0 }
 0x594   :  { %v1819_v25 = vpop.eup %1818 }
 0x595   :  { %v339_v27 = vmul.f32 %v1819_v25, %v1815_v8 }
 0x597   :  { %v340_v29 = vpack.c.bf16 %v339_v27, %v338_v26 }
 0x599   :  { %1652 = vmatmul.mubr.msk.bf16.vlgmr.msra.gmra.mrb[8].mxu0 %vm151_vm2, %v340_v29  ;;  %v2106_v29 = vld [vmem:[%s2277_s3 + $0x10] sm:$0xff]  }
 0x59a   :  { %1662 = vmatpush3.bf16.msra.mxu0 %v2056_v28  ;;  %1663 = vmatprep.mubr.msk.bf16.mxu0 %vm1894_vm1, %v1893_v12 }
 0x59b   :  { %1673 = vmatprep.subr.bf16.mxu0 %v1893_v12 }
 0x5a1   :  { %1664 = vmatmul.mubr.msk.bf16.vlgmr.msra.gmra.mrb[12].mxu0 %vm151_vm2, %v266_v54 }
 0x5a2   :  { %1675 = vmatprep.mubr.msk.bf16.mxu0 %vm1894_vm1, %v1893_v12 }
 0x66c   :  { %v382_v36 = vpop.f32.mrb[8].mxu0 }
 0x66d   :  { %v1653_v37 = vpop.f32.mrb[9].mxu0 }
 0x66e   :  { %v385_v39 = vpop.f32.mrb[10].mxu0 }
 0x66f   :  { %v389_v40 = vpack.c.bf16 %v385_v39, %v382_v36  ;;  %v1654_v41 = vpop.f32.mrb[11].mxu0 }
 0x671   :  { %1658 = vmatmul.mubr.msk.bf16.vlgmr.msra.gmra.mrb[12].mxu1 %vm151_vm2, %v389_v40 }
 0x672   :  { %1668 = vmatpush3.bf16.xpose.msra.mxu1 %v498_v42  ;;  %1669 = vmatprep.mubr.msk.bf16.mxu1 %vm1894_vm1, %v1893_v12 }
 0x673   :  { %1679 = vmatprep.subr.bf16.mxu1 %v1893_v12 }
 0x674   :  { %v483_v43 = vpop.f32.mrb[12].mxu0 }
 0x675   :  { %v1665_v44 = vpop.f32.mrb[13].mxu0 }
 0x676   :  { %v486_v45 = vpop.f32.mrb[14].mxu0 }
 0x677   :  { %v1666_v46 = vpop.f32.mrb[15].mxu0 }
 0x679   :  { %1670 = vmatmul.mubr.msk.bf16.vlgmr.msra.gmra.mrb[16].mxu1 %vm151_vm2, %v491_v47 }
 0x67a   :  { %1681 = vmatprep.mubr.msk.bf16.mxu1 %vm1894_vm1, %v1893_v12  ;;  %1680 = vmatpush3.bf16.msra.mxu1 %v2106_v29 }
 0x67b   :  { %1691 = vmatprep.subr.bf16.mxu1 %v1893_v12 }
 0x744   :  { %v433_v48 = vpop.f32.mrb[12].mxu1 }
 0x745   :  { %v2078_v49 = vadd.f32 %v483_v43, %v433_v48  ;;  %v1659_v50 = vpop.f32.mrb[13].mxu1 }
 0x746   :  { %v436_v51 = vpop.f32.mrb[14].mxu1 }
 0x747   :  { %v2080_v52 = vadd.f32 %v486_v45, %v436_v51  ;;  %v1660_v53 = vpop.f32.mrb[15].mxu1 }
 0x74c   :  { %v534_v54 = vpop.f32.mrb[16].mxu1 }
 0x74d   :  { %v535_v55 = vadd.f32 %v534_v54, %v1993_v21  ;;  %v1671_v56 = vpop.f32.mrb[17].mxu1 }
 0x74e   :  { %v537_v57 = vpop.f32.mrb[18].mxu1 }
 0x74f   :  { %v538_v58 = vadd.f32 %v537_v57, %v1998_v23  ;;  %v1672_v59 = vpop.f32.mrb[19].mxu1  ;;  %v541_v60 = vsel %vm151_vm2, %v535_v55, -inf }
 0x750   :  { %542 = vmax.xlane.f32.xlu0 %v541_v60 }
 0x751   :  { %v544_v61 = vsel %vm151_vm2, %v538_v58, -inf }
 0x752   :  { %545 = vmax.xlane.f32.xlu1 %v544_v61 }
 0x763   :  { %666 = vrot.lane.b32.xlu1 %v1976_v16, %s1900_s27 }
 0x7dd   :  { %v543_v62 = vpop.xlane.xlu0 %542 }
 0x7de   :  { %v547_v63 = vsub.f32 %v535_v55, %v543_v62 }
 0x7df   :  { %v546_v0 = vpop.xlane.xlu1 %545 }
 0x7e0   :  { %v549_v1 = vmul.f32 1.442695, %v547_v63  ;;  %v548_v2 = vsub.f32 %v538_v58, %v546_v0 }
 0x7e2   :  { %1820 = vpow2.f32 %v549_v1  ;;  %v551_v3 = vmul.f32 1.442695, %v548_v2 }
 0x7e3   :  { %v667_v25 = vpop.permute.xlu1 %666 }
 0x7e4   :  { %1822 = vpow2.f32 %v551_v3  ;;  %v672_v27 = vsel %vm151_vm2, %v667_v25, 0 }
 0x7ec   :  { %v1821_v4 = vpop.eup %1820 }
 0x7ed   :  { %v553_v5 = vsel %vm151_vm2, %v1821_v4, 0.0 }
 0x7ee   :  { %v1823_v6 = vpop.eup %1822  ;;  %554 = vadd.xlane.f32.xlu0 %v553_v5 }
 0x7ef   :  { %v556_v7 = vsel %vm151_vm2, %v1823_v6, 0.0 }
 0x7f2   :  { %557 = vadd.xlane.f32.xlu0 %v556_v7 }
 0x808   :  { %564 = vrot.lane.b32.xlu0 %v1978_v18, %s1898_s18 }
 0x80c   :  { %664 = vrot.lane.b32.xlu0 %v1976_v16, %s1901_s28 }
 0x87b   :  { %v555_v8 = vpop.xlane.xlu0 %554 }
 0x87c   :  { %1824 = vrcp.f32 %v555_v8 }
 0x87f   :  { %v558_v11 = vpop.xlane.xlu0 %557 }
 0x880   :  { %1826 = vrcp.f32 %v558_v11  ;;  %v2153_v11 = vld [vmem:[%s2277_s3 + $0x18] sm:$0xff]  }
 0x883   :  { %v565_v15 = vpop.permute.xlu0 %564 }
 0x884   :  { %1674 = vmatpush3.bf16.msra.mxu0 %v565_v15 }
 0x885   :  { %1685 = vmatprep.subr.bf16.mxu0 %v1893_v12 }
 0x886   :  { %v1825_v19 = vpop.eup %1824 }
 0x887   :  { %v561_v22 = vmul.f32 %v1825_v19, %v1821_v4  ;;  %v665_v16 = vpop.permute.xlu0 %664 }
 0x88a   :  { %v1827_v20 = vpop.eup %1826 }
 0x88b   :  { %v562_v24 = vmul.f32 %v1827_v20, %v1823_v6 }
 0x88d   :  { %v563_v26 = vpack.c.bf16 %v562_v24, %v561_v22 }
 0x88f   :  { %1676 = vmatmul.mubr.msk.bf16.vlgmr.msra.gmra.mrb[16].mxu0 %vm151_vm2, %v563_v26 }
 0x890   :  { %1686 = vmatpush3.bf16.xpose.msra.mxu0 %v672_v27  ;;  %1687 = vmatprep.mubr.msk.bf16.mxu0 %vm1894_vm1, %v1893_v12 }
 0x891   :  { %1697 = vmatprep.subr.bf16.mxu0 %v1893_v12 }
 0x897   :  { %1688 = vmatmul.mubr.msk.bf16.vlgmr.msra.gmra.mrb[20].mxu0 %vm151_vm2, %v665_v16 }
 0x898   :  { %1699 = vmatprep.mubr.msk.bf16.mxu0 %vm1894_vm1, %v1893_v12  ;;  %1698 = vmatpush3.bf16.msra.mxu0 %v2153_v11 }
 0x899   :  { %1709 = vmatprep.subr.bf16.mxu0 %v1893_v12 }
 0x962   :  { %v604_v30 = vpop.f32.mrb[16].mxu0 }
 0x963   :  { %v1677_v31 = vpop.f32.mrb[17].mxu0 }
 0x964   :  { %v607_v32 = vpop.f32.mrb[18].mxu0 }
 0x965   :  { %v611_v34 = vpack.c.bf16 %v607_v32, %v604_v30  ;;  %v1678_v36 = vpop.f32.mrb[19].mxu0 }
 0x967   :  { %1682 = vmatmul.mubr.msk.bf16.vlgmr.msra.gmra.mrb[20].mxu1 %vm151_vm2, %v611_v34 }
 0x968   :  { %1693 = vmatprep.mubr.msk.bf16.mxu1 %vm1894_vm1, %v1893_v12 }
 0x96a   :  { %v708_v37 = vpop.f32.mrb[20].mxu0 }
 0x96b   :  { %v709_v38 = vadd.f32 %v708_v37, %v1993_v21  ;;  %v1689_v39 = vpop.f32.mrb[21].mxu0 }
 0x96c   :  { %v711_v40 = vpop.f32.mrb[22].mxu0 }
 0x96d   :  { %v712_v41 = vadd.f32 %v711_v40, %v1998_v23  ;;  %v1690_v42 = vpop.f32.mrb[23].mxu0  ;;  %v715_v43 = vsel %vm151_vm2, %v709_v38, -inf }
 0x96e   :  { %716 = vmax.xlane.f32.xlu0 %v715_v43 }
 0x96f   :  { %v718_v44 = vsel %vm151_vm2, %v712_v41, -inf }
 0x970   :  { %719 = vmax.xlane.f32.xlu1 %v718_v44 }
 0x981   :  { %738 = vrot.lane.b32.xlu1 %v1978_v18, %s1901_s28 }
 0x985   :  { %960 = vrot.lane.b32.xlu1 %v2066_v33, %s1896_s1 }
 0x989   :  { %958 = vrot.lane.b32.xlu1 %v2066_v33, %s1897_s17 }
 0x9fb   :  { %v717_v45 = vpop.xlane.xlu0 %716 }
 0x9fc   :  { %v721_v46 = vsub.f32 %v709_v38, %v717_v45 }
 0x9fd   :  { %v720_v47 = vpop.xlane.xlu1 %719 }
 0x9fe   :  { %v723_v48 = vmul.f32 1.442695, %v721_v46  ;;  %v722_v50 = vsub.f32 %v712_v41, %v720_v47 }
 0xa00   :  { %1828 = vpow2.f32 %v723_v48  ;;  %v725_v51 = vmul.f32 1.442695, %v722_v50 }
 0xa01   :  { %v739_v53 = vpop.permute.xlu1 %738 }
 0xa02   :  { %1830 = vpow2.f32 %v725_v51  ;;  %1692 = vmatpush3.bf16.msra.mxu1 %v739_v53 }
 0xa03   :  { %1703 = vmatprep.subr.bf16.mxu1 %v1893_v12 }
 0xa0a   :  { %v1829_v54 = vpop.eup %1828 }
 0xa0b   :  { %v727_v18 = vsel %vm151_vm2, %v1829_v54, 0.0 }
 0xa0c   :  { %v1831_v55 = vpop.eup %1830  ;;  %728 = vadd.xlane.f32.xlu0 %v727_v18 }
 0xa0d   :  { %v730_v56 = vsel %vm151_vm2, %v1831_v55, 0.0 }
 0xa10   :  { %731 = vadd.xlane.f32.xlu0 %v730_v56 }
 0xa26   :  { %841 = vrot.lane.b32.xlu0 %v2066_v33, %s1895_s2 }
 0xa3a   :  { %v655_v57 = vpop.f32.mrb[20].mxu1 }
 0xa3b   :  { %v2129_v58 = vadd.f32 %v655_v57, %v2078_v49  ;;  %v1683_v59 = vpop.f32.mrb[21].mxu1  ;;  %v961_v49 = vpop.permute.xlu1 %960 }
 0xa3c   :  { %v658_v60 = vpop.f32.mrb[22].mxu1 }
 0xa3d   :  { %v2132_v61 = vadd.f32 %v658_v60, %v2080_v52  ;;  %v1684_v62 = vpop.f32.mrb[23].mxu1  ;;  %v966_v52 = vsel %vm151_vm2, %v961_v49, 0 }
 0xa3f   :  { %v959_v8 = vpop.permute.xlu1 %958 }
 0xa99   :  { %v729_v63 = vpop.xlane.xlu0 %728 }
 0xa9a   :  { %1832 = vrcp.f32 %v729_v63 }
 0xa9d   :  { %v732_v0 = vpop.xlane.xlu0 %731 }
 0xa9e   :  { %1834 = vrcp.f32 %v732_v0 }
 0xaa1   :  { %v842_v5 = vpop.permute.xlu0 %841 }
 0xaa2   :  { %v847_v7 = vsel %vm151_vm2, %v842_v5, 0 }
 0xaa4   :  { %v1833_v1 = vpop.eup %1832 }
 0xaa5   :  { %v735_v3 = vmul.f32 %v1833_v1, %v1829_v54 }
 0xaa8   :  { %v1835_v2 = vpop.eup %1834 }
 0xaa9   :  { %v736_v4 = vmul.f32 %v1835_v2, %v1831_v55 }
 0xaab   :  { %v737_v6 = vpack.c.bf16 %v736_v4, %v735_v3  ;;  %v2183_v3 = vld [vmem:[%s2278_s4] ss:$0 sm:$0xff]  ;;  %s1902_s4 = smov [#allocation2]  }
 0xaac   :  { %s1533_s9 = sshll.u32 %s1902_s4, 4  ;;  %s1534_s9 = int_to_ptr.vmem [resolvable:$true] %s1533_s9 }
 0xaad   :  { %1694 = vmatmul.mubr.msk.bf16.vlgmr.msra.gmra.mrb[24].mxu1 %vm151_vm2, %v737_v6  ;;  %s1868_s10 = scalar_lea.vmem %s1534_s9, 512  ;;  %p1873_p1 = scmp.lt.s32.totalorder %s1534_s9, %s1534_s9 }
 0xaae   :  { %1704 = vmatpush3.bf16.xpose.msra.mxu1 %v847_v7  ;;  %1705 = vmatprep.mubr.msk.bf16.mxu1 %vm1894_vm1, %v1893_v12  ;;  %p1869_p0 = scmp.ne.s32.totalorder %s1534_s9, %s1868_s10  ;;  %p1874_p2 = scmp.lt.s32.totalorder %s1868_s10, %s1868_s10 }
 0xaaf   :  { %1715 = vmatprep.subr.bf16.mxu1 %v1893_v12 }
 0xab0   :  { %p1875_p3 = por %p1874_p2, %p1873_p1 }
 0xab2   :  { %p1876_p4 = pnand %p1875_p3, %p1869_p0 }
 0xab5   :  { %1706 = vmatmul.mubr.msk.bf16.vlgmr.msra.gmra.mrb[28].mxu1 %vm151_vm2, %v2066_v33 }
 0xab6   :  { %1716 = vmatpush3.bf16.xpose.msra.mxu1 %v966_v52  ;;  %1717 = vmatprep.mubr.msk.bf16.mxu1 %vm1894_vm1, %v1893_v12 }
 0xab7   :  { %1727 = vmatprep.subr.bf16.mxu1 %v1893_v12 }
 0xabd   :  { %1718 = vmatmul.mubr.msk.bf16.vlgmr.msra.gmra.mrb[32].mxu1 %vm151_vm2, %v959_v8 }
 0xabe   :  { %1728 = vmatpush3.bf16.msra.mxu1 %v2048_v17  ;;  %1729 = vmatprep.mubr.msk.bf16.mxu1 %vm1894_vm1, %v1893_v12 }
 0xabf   :  { %1739 = vmatprep.subr.bf16.mxu1 %v1893_v12 }
 0xb80   :  { %v778_v15 = vpop.f32.mrb[24].mxu1 }
 0xb81   :  { %v1695_v19 = vpop.f32.mrb[25].mxu1 }
 0xb82   :  { %v781_v20 = vpop.f32.mrb[26].mxu1 }
 0xb83   :  { %v785_v22 = vpack.c.bf16 %v781_v20, %v778_v15  ;;  %v1696_v24 = vpop.f32.mrb[27].mxu1 }
 0xb85   :  { %1700 = vmatmul.mubr.msk.bf16.vlgmr.msra.gmra.mrb[24].mxu0 %vm151_vm2, %v785_v22 }
 0xb86   :  { %1710 = vmatpush3.bf16.msra.mxu0 %v2068_v35  ;;  %1711 = vmatprep.mubr.msk.bf16.mxu0 %vm1894_vm1, %v1893_v12 }
 0xb87   :  { %1721 = vmatprep.subr.bf16.mxu0 %v1893_v12 }
 0xb88   :  { %v883_v17 = vpop.f32.mrb[28].mxu1 }
 0xb89   :  { %v884_v25 = vadd.f32 %v883_v17, %v1993_v21  ;;  %v1707_v26 = vpop.f32.mrb[29].mxu1 }
 0xb8a   :  { %v886_v27 = vpop.f32.mrb[30].mxu1 }
 0xb8b   :  { %v887_v16 = vadd.f32 %v886_v27, %v1998_v23  ;;  %v1708_v30 = vpop.f32.mrb[31].mxu1  ;;  %v890_v31 = vsel %vm151_vm2, %v884_v25, -inf }
 0xb8c   :  { %891 = vmax.xlane.f32.xlu0 %v890_v31 }
 0xb8d   :  { %v893_v32 = vsel %vm151_vm2, %v887_v16, -inf }
 0xb8e   :  { %894 = vmax.xlane.f32.xlu1 %v893_v32 }
 0xb90   :  { %v1002_v34 = vpop.f32.mrb[32].mxu1 }
 0xb91   :  { %v1003_v36 = vadd.f32 %v1002_v34, %v1993_v21  ;;  %v1719_v37 = vpop.f32.mrb[33].mxu1 }
 0xb92   :  { %v1005_v38 = vpop.f32.mrb[34].mxu1 }
 0xb93   :  { %v1006_v39 = vadd.f32 %v1005_v38, %v1998_v23  ;;  %v1720_v40 = vpop.f32.mrb[35].mxu1  ;;  %v1009_v41 = vsel %vm151_vm2, %v1003_v36, -inf }
 0xb94   :  { %1010 = vmax.xlane.f32.xlu0 %v1009_v41 }
 0xb95   :  { %v1012_v42 = vsel %vm151_vm2, %v1006_v39, -inf }
 0xb98   :  { %1013 = vmax.xlane.f32.xlu0 %v1012_v42 }
 0xc19   :  { %v892_v43 = vpop.xlane.xlu0 %891 }
 0xc1a   :  { %v896_v44 = vsub.f32 %v884_v25, %v892_v43 }
 0xc1b   :  { %v895_v45 = vpop.xlane.xlu1 %894 }
 0xc1c   :  { %v898_v46 = vmul.f32 1.442695, %v896_v44  ;;  %v897_v47 = vsub.f32 %v887_v16, %v895_v45 }
 0xc1e   :  { %1836 = vpow2.f32 %v898_v46  ;;  %v900_v48 = vmul.f32 1.442695, %v897_v47 }
 0xc20   :  { %1838 = vpow2.f32 %v900_v48 }
 0xc21   :  { %v1011_v50 = vpop.xlane.xlu0 %1010 }
 0xc22   :  { %v1015_v51 = vsub.f32 %v1003_v36, %v1011_v50 }
 0xc24   :  { %v1017_v53 = vmul.f32 1.442695, %v1015_v51 }
 0xc25   :  { %v1014_v54 = vpop.xlane.xlu0 %1013 }
 0xc26   :  { %1840 = vpow2.f32 %v1017_v53  ;;  %v1016_v18 = vsub.f32 %v1006_v39, %v1014_v54 }
 0xc28   :  { %v1837_v55 = vpop.eup %1836  ;;  %v1019_v56 = vmul.f32 1.442695, %v1016_v18 }
 0xc29   :  { %v902_v57 = vsel %vm151_vm2, %v1837_v55, 0.0 }
 0xc2a   :  { %v1839_v59 = vpop.eup %1838  ;;  %1842 = vpow2.f32 %v1019_v56  ;;  %903 = vadd.xlane.f32.xlu1 %v902_v57 }
 0xc2b   :  { %v905_v60 = vsel %vm151_vm2, %v1839_v59, 0.0 }
 0xc2c   :  { %906 = vadd.xlane.f32.xlu0 %v905_v60 }
 0xc30   :  { %v1841_v62 = vpop.eup %1840 }
 0xc31   :  { %v1021_v63 = vsel %vm151_vm2, %v1841_v62, 0.0 }
 0xc32   :  { %1022 = vadd.xlane.f32.xlu1 %v1021_v63 }
 0xc34   :  { %v1843_v0 = vpop.eup %1842 }
 0xc35   :  { %v1024_v1 = vsel %vm151_vm2, %v1843_v0, 0.0 }
 0xc36   :  { %1025 = vadd.xlane.f32.xlu0 %v1024_v1 }
 0xc43   :  { %1033 = vrot.lane.b32.xlu1 %v2068_v35, %s1897_s17 }
 0xc47   :  { %1169 = vrot.lane.b32.xlu1 %v2066_v33, %s1898_s18 }
 0xc4c   :  { %1171 = vrot.lane.b32.xlu0 %v2066_v33, %s1899_s23 }
 0xc58   :  { %v829_v2 = vpop.f32.mrb[24].mxu0 }
 0xc59   :  { %v836_v4 = vadd.f32 %v829_v2, %v2129_v58  ;;  %v1701_v5 = vpop.f32.mrb[25].mxu0 }
 0xc5a   :  { %v832_v6 = vpop.f32.mrb[26].mxu0 }
 0xc5b   :  { %v1512_v7 = vadd.f32 %v2183_v3, %v836_v4  ;;  %v837_v49 = vadd.f32 %v832_v6, %v2132_v61  ;;  %v1702_v52 = vpop.f32.mrb[27].mxu0 }
 0xc5d   :  { %v1516_v8 = vadd.f32 %v1512_v7, %v1962_v9  ;;  %v1513_v15 = vadd.f32 %v2183_v3, %v837_v49 }
 0xc5f   :  { %v1520_v19 = vsel %vm76_vm0, %v1516_v8, 0.0  ;;  %v1517_v20 = vadd.f32 %v1513_v15, %v1967_v10 }
 0xc60   :  { %1524 = vst [vmem:[#allocation2] sm:$0xff] %v1520_v19 }
 0xc61   :  { %v1521_v22 = vsel %vm76_vm0, %v1517_v20, 0.0 }
 0xc62   :  { %1525 = vst [vmem:[#allocation2 + $0x8] sm:$0xff] %v1521_v22 }
 0xcb7   :  { %v904_v58 = vpop.xlane.xlu1 %903 }
 0xcb8   :  { %1844 = vrcp.f32 %v904_v58 }
 0xcb9   :  { %v907_v24 = vpop.xlane.xlu0 %906 }
 0xcba   :  { %1846 = vrcp.f32 %v907_v24 }
 0xcbf   :  { %v1023_v17 = vpop.xlane.xlu1 %1022 }
 0xcc0   :  { %1848 = vrcp.f32 %v1023_v17 }
 0xcc2   :  { %v1845_v25 = vpop.eup %1844 }
 0xcc3   :  { %v1026_v61 = vpop.xlane.xlu0 %1025  ;;  %v910_v9 = vmul.f32 %v1845_v25, %v1837_v55  ;;  %v1034_v30 = vpop.permute.xlu1 %1033 }
 0xcc4   :  { %v1847_v26 = vpop.eup %1846  ;;  %1850 = vrcp.f32 %v1026_v61 }
 0xcc5   :  { %v911_v27 = vmul.f32 %v1847_v26, %v1839_v59 }
 0xcc7   :  { %v912_v16 = vpack.c.bf16 %v911_v27, %v910_v9  ;;  %v1172_v44 = vpop.permute.xlu0 %1171  ;;  %v1170_v48 = vpop.permute.xlu1 %1169 }
 0xcc8   :  { %v1177_v47 = vsel %vm151_vm2, %v1172_v44, 0 }
 0xcc9   :  { %1712 = vmatmul.mubr.msk.bf16.vlgmr.msra.gmra.mrb[28].mxu0 %vm151_vm2, %v912_v16 }
 0xcca   :  { %1722 = vmatpush3.bf16.msra.mxu0 %v1034_v30  ;;  %1723 = vmatprep.mubr.msk.bf16.mxu0 %vm1894_vm1, %v1893_v12  ;;  %v1849_v10 = vpop.eup %1848 }
 0xccb   :  { %1733 = vmatprep.subr.bf16.mxu0 %v1893_v12  ;;  %v1029_v32 = vmul.f32 %v1849_v10, %v1841_v62 }
 0xcce   :  { %v1851_v31 = vpop.eup %1850 }
 0xccf   :  { %v1030_v34 = vmul.f32 %v1851_v31, %v1843_v0 }
 0xcd1   :  { %v1031_v36 = vpack.c.bf16 %v1030_v34, %v1029_v32 }
 0xcd3   :  { %1724 = vmatmul.mubr.msk.bf16.vlgmr.msra.gmra.mrb[32].mxu0 %vm151_vm2, %v1031_v36 }
 0xcd4   :  { %1734 = vmatpush3.bf16.msra.mxu0 %v2056_v28  ;;  %1735 = vmatprep.mubr.msk.bf16.mxu0 %vm1894_vm1, %v1893_v12 }
 0xcd5   :  { %1745 = vmatprep.subr.bf16.mxu0 %v1893_v12 }
 0xd9c   :  { %v950_v37 = vpop.f32.mrb[28].mxu0 }
 0xd9d   :  { %v1713_v38 = vpop.f32.mrb[29].mxu0 }
 0xd9e   :  { %v953_v39 = vpop.f32.mrb[30].mxu0 }
 0xd9f   :  { %v957_v40 = vpack.c.bf16 %v953_v39, %v950_v37  ;;  %v1714_v41 = vpop.f32.mrb[31].mxu0 }
 0xda1   :  { %1736 = vmatmul.mubr.msk.bf16.vlgmr.msra.gmra.mrb[36].mxu0 %vm151_vm2, %v957_v40 }
 0xda2   :  { %1747 = vmatprep.mubr.msk.bf16.mxu0 %vm1894_vm1, %v1893_v12 }
 0xda6   :  { %v1073_v42 = vpop.f32.mrb[32].mxu0 }
 0xda7   :  { %v1725_v43 = vpop.f32.mrb[33].mxu0 }
 0xda8   :  { %v1076_v45 = vpop.f32.mrb[34].mxu0 }
 0xda9   :  { %v1080_v28 = vpack.c.bf16 %v1076_v45, %v1073_v42  ;;  %v1726_v46 = vpop.f32.mrb[35].mxu0 }
 0xdab   :  { %1730 = vmatmul.mubr.msk.bf16.vlgmr.msra.gmra.mrb[36].mxu1 %vm151_vm2, %v1080_v28 }
 0xdac   :  { %1740 = vmatpush3.bf16.xpose.msra.mxu1 %v1177_v47  ;;  %1741 = vmatprep.mubr.msk.bf16.mxu1 %vm1894_vm1, %v1893_v12 }
 0xdad   :  { %1751 = vmatprep.subr.bf16.mxu1 %v1893_v12 }
 0xdb3   :  { %1742 = vmatmul.mubr.msk.bf16.vlgmr.msra.gmra.mrb[40].mxu1 %vm151_vm2, %v1170_v48 }
 0xdb4   :  { %1752 = vmatpush3.bf16.msra.mxu1 %v2106_v29  ;;  %1753 = vmatprep.mubr.msk.bf16.mxu1 %vm1894_vm1, %v1893_v12 }
 0xdb5   :  { %1763 = vmatprep.subr.bf16.mxu1 %v1893_v12 }
 0xe74   :  { %v1162_v50 = vpop.f32.mrb[36].mxu0 }
 0xe75   :  { %v1737_v51 = vpop.f32.mrb[37].mxu0 }
 0xe76   :  { %v1165_v53 = vpop.f32.mrb[38].mxu0 }
 0xe77   :  { %v1738_v54 = vpop.f32.mrb[39].mxu0 }
 0xe7e   :  { %v1118_v18 = vpop.f32.mrb[36].mxu1 }
 0xe7f   :  { %v2215_v55 = vadd.f32 %v1162_v50, %v1118_v18  ;;  %v1731_v56 = vpop.f32.mrb[37].mxu1 }
 0xe80   :  { %v1121_v57 = vpop.f32.mrb[38].mxu1 }
 0xe81   :  { %v2217_v59 = vadd.f32 %v1165_v53, %v1121_v57  ;;  %v1732_v60 = vpop.f32.mrb[39].mxu1 }
 0xe86   :  { %v1213_v62 = vpop.f32.mrb[40].mxu1 }
 0xe87   :  { %v1214_v29 = vadd.f32 %v1213_v62, %v1993_v21  ;;  %v1743_v63 = vpop.f32.mrb[41].mxu1 }
 0xe88   :  { %v1216_v0 = vpop.f32.mrb[42].mxu1 }
 0xe89   :  { %v1217_v1 = vadd.f32 %v1216_v0, %v1998_v23  ;;  %v1744_v2 = vpop.f32.mrb[43].mxu1  ;;  %v1220_v4 = vsel %vm151_vm2, %v1214_v29, -inf }
 0xe8a   :  { %1221 = vmax.xlane.f32.xlu1 %v1220_v4 }
 0xe8b   :  { %v1223_v5 = vsel %vm151_vm2, %v1217_v1, -inf }
 0xe8c   :  { %1224 = vmax.xlane.f32.xlu0 %v1223_v5 }
 0xf17   :  { %v1222_v6 = vpop.xlane.xlu1 %1221 }
 0xf18   :  { %v1226_v7 = vsub.f32 %v1214_v29, %v1222_v6 }
 0xf19   :  { %v1225_v49 = vpop.xlane.xlu0 %1224 }
 0xf1a   :  { %v1228_v52 = vmul.f32 1.442695, %v1226_v7  ;;  %v1227_v8 = vsub.f32 %v1217_v1, %v1225_v49 }
 0xf1c   :  { %1852 = vpow2.f32 %v1228_v52  ;;  %v1230_v15 = vmul.f32 1.442695, %v1227_v8 }
 0xf1e   :  { %1854 = vpow2.f32 %v1230_v15 }
 0xf26   :  { %v1853_v19 = vpop.eup %1852 }
 0xf27   :  { %v1232_v20 = vsel %vm151_vm2, %v1853_v19, 0.0 }
 0xf28   :  { %v1855_v22 = vpop.eup %1854  ;;  %1233 = vadd.xlane.f32.xlu0 %v1232_v20 }
 0xf29   :  { %v1235_v58 = vsel %vm151_vm2, %v1855_v22, 0.0 }
 0xf2a   :  { %1236 = vadd.xlane.f32.xlu1 %v1235_v58 }
 0xf3b   :  { %1339 = vrot.lane.b32.xlu1 %v2066_v33, %s1900_s27 }
 0xf3e   :  { %1243 = vrot.lane.b32.xlu0 %v2068_v35, %s1898_s18 }
 0xf3f   :  { %1337 = vrot.lane.b32.xlu1 %v2066_v33, %s1901_s28 }
 0xfb5   :  { %v1234_v24 = vpop.xlane.xlu0 %1233 }
 0xfb6   :  { %1856 = vrcp.f32 %v1234_v24 }
 0xfb7   :  { %v1237_v17 = vpop.xlane.xlu1 %1236 }
 0xfb8   :  { %1858 = vrcp.f32 %v1237_v17 }
 0xfb9   :  { %v1244_v25 = vpop.permute.xlu0 %1243 }
 0xfba   :  { %1746 = vmatpush3.bf16.msra.mxu0 %v1244_v25 }
 0xfbb   :  { %1757 = vmatprep.subr.bf16.mxu0 %v1893_v12  ;;  %v1340_v16 = vpop.permute.xlu1 %1339 }
 0xfbc   :  { %v1345_v10 = vsel %vm151_vm2, %v1340_v16, 0 }
 0xfbf   :  { %v1338_v33 = vpop.permute.xlu1 %1337 }
 0xfc0   :  { %v1857_v61 = vpop.eup %1856 }
 0xfc1   :  { %v1240_v9 = vmul.f32 %v1857_v61, %v1853_v19 }
 0xfc2   :  { %v1859_v26 = vpop.eup %1858 }
 0xfc3   :  { %v1241_v27 = vmul.f32 %v1859_v26, %v1855_v22 }
 0xfc5   :  { %v1242_v30 = vpack.c.bf16 %v1241_v27, %v1240_v9 }
 0xfc7   :  { %1748 = vmatmul.mubr.msk.bf16.vlgmr.msra.gmra.mrb[40].mxu0 %vm151_vm2, %v1242_v30 }
 0xfc8   :  { %1758 = vmatpush3.bf16.xpose.msra.mxu0 %v1345_v10  ;;  %1759 = vmatprep.mubr.msk.bf16.mxu0 %vm1894_vm1, %v1893_v12 }
 0xfc9   :  { %1769 = vmatprep.subr.bf16.mxu0 %v1893_v12 }
 0xfcf   :  { %1760 = vmatmul.mubr.msk.bf16.vlgmr.msra.gmra.mrb[44].mxu0 %vm151_vm2, %v1338_v33 }
 0xfd0   :  { %1770 = vmatpush3.bf16.msra.mxu0 %v2153_v11  ;;  %1771 = vmatprep.mubr.msk.bf16.mxu0 %vm1894_vm1, %v1893_v12 }
0x109a   :  { %v1283_v31 = vpop.f32.mrb[40].mxu0 }
0x109b   :  { %v1749_v32 = vpop.f32.mrb[41].mxu0 }
0x109c   :  { %v1286_v34 = vpop.f32.mrb[42].mxu0 }
0x109d   :  { %v1290_v36 = vpack.c.bf16 %v1286_v34, %v1283_v31  ;;  %v1750_v37 = vpop.f32.mrb[43].mxu0 }
0x109f   :  { %1754 = vmatmul.mubr.msk.bf16.vlgmr.msra.gmra.mrb[44].mxu1 %vm151_vm2, %v1290_v36 }
0x10a0   :  { %1765 = vmatprep.mubr.msk.bf16.mxu1 %vm1894_vm1, %v1893_v12 }
0x10a2   :  { %v1381_v38 = vpop.f32.mrb[44].mxu0 }
0x10a3   :  { %v1382_v39 = vadd.f32 %v1381_v38, %v1993_v21  ;;  %v1761_v40 = vpop.f32.mrb[45].mxu0 }
0x10a4   :  { %v1384_v41 = vpop.f32.mrb[46].mxu0 }
0x10a5   :  { %v1385_v11 = vadd.f32 %v1384_v41, %v1998_v23  ;;  %v1762_v42 = vpop.f32.mrb[47].mxu0  ;;  %v1388_v43 = vsel %vm151_vm2, %v1382_v39, -inf }
0x10a6   :  { %1389 = vmax.xlane.f32.xlu0 %v1388_v43 }
0x10a7   :  { %v1391_v44 = vsel %vm151_vm2, %v1385_v11, -inf }
0x10a8   :  { %1392 = vmax.xlane.f32.xlu1 %v1391_v44 }
0x10b9   :  { %1411 = vrot.lane.b32.xlu1 %v2068_v35, %s1901_s28 }
0x1133   :  { %v1390_v45 = vpop.xlane.xlu0 %1389 }
0x1134   :  { %v1394_v28 = vsub.f32 %v1382_v39, %v1390_v45 }
0x1135   :  { %v1393_v12 = vpop.xlane.xlu1 %1392 }
0x1136   :  { %v1396_v46 = vmul.f32 1.442695, %v1394_v28  ;;  %v1395_v47 = vsub.f32 %v1385_v11, %v1393_v12 }
0x1138   :  { %1860 = vpow2.f32 %v1396_v46  ;;  %v1398_v21 = vmul.f32 1.442695, %v1395_v47 }
0x1139   :  { %v1412_v48 = vpop.permute.xlu1 %1411 }
0x113a   :  { %1862 = vpow2.f32 %v1398_v21  ;;  %1764 = vmatpush3.bf16.msra.mxu1 %v1412_v48 }
0x1142   :  { %v1861_v23 = vpop.eup %1860 }
0x1143   :  { %v1400_v50 = vsel %vm151_vm2, %v1861_v23, 0.0 }
0x1144   :  { %v1863_v51 = vpop.eup %1862  ;;  %1401 = vadd.xlane.f32.xlu0 %v1400_v50 }
0x1145   :  { %v1403_v53 = vsel %vm151_vm2, %v1863_v51, 0.0 }
0x1148   :  { %1404 = vadd.xlane.f32.xlu0 %v1403_v53 }
0x1172   :  { %v1328_v54 = vpop.f32.mrb[44].mxu1 }
0x1173   :  { %v1335_v35 = vadd.f32 %v1328_v54, %v2215_v55  ;;  %v1755_v18 = vpop.f32.mrb[45].mxu1 }
0x1174   :  { %v1331_v56 = vpop.f32.mrb[46].mxu1 }
0x1175   :  { %v1336_v57 = vadd.f32 %v1331_v56, %v2217_v59  ;;  %v1756_v60 = vpop.f32.mrb[47].mxu1 }
0x11d1   :  { %v1402_v62 = vpop.xlane.xlu0 %1401 }
0x11d2   :  { %1864 = vrcp.f32 %v1402_v62 }
0x11d5   :  { %v1405_v29 = vpop.xlane.xlu0 %1404 }
0x11d6   :  { %1866 = vrcp.f32 %v1405_v29 }
0x11dc   :  { %v1865_v63 = vpop.eup %1864 }
0x11dd   :  { %v1408_v1 = vmul.f32 %v1865_v63, %v1861_v23 }
0x11e0   :  { %v1867_v0 = vpop.eup %1866 }
0x11e1   :  { %v1409_v2 = vmul.f32 %v1867_v0, %v1863_v51 }
0x11e3   :  { %v1410_v4 = vpack.c.bf16 %v1409_v2, %v1408_v1 }
0x11e5   :  { %1766 = vmatmul.mubr.msk.bf16.vlgmr.msra.gmra.mrb[48].mxu1 %vm151_vm2, %v1410_v4 }
0x12b8   :  { %v1451_v5 = vpop.f32.mrb[48].mxu1 }
0x12b9   :  { %v1767_v6 = vpop.f32.mrb[49].mxu1 }
0x12ba   :  { %v1454_v7 = vpop.f32.mrb[50].mxu1 }
0x12bb   :  { %v1458_v55 = vpack.c.bf16 %v1454_v7, %v1451_v5  ;;  %v1768_v49 = vpop.f32.mrb[51].mxu1 }
0x12bd   :  { %1772 = vmatmul.mubr.msk.bf16.vlgmr.msra.gmra.mrb[48].mxu0 %vm151_vm2, %v1458_v55 }
0x1390   :  { %v1496_v59 = vpop.f32.mrb[48].mxu0 }
0x1391   :  { %v1503_v52 = vadd.f32 %v1496_v59, %v1335_v35  ;;  %v1773_v8 = vpop.f32.mrb[49].mxu0 }
0x1392   :  { %v1499_v15 = vpop.f32.mrb[50].mxu0 }
0x1393   :  { %v1514_v19 = vadd.f32 %v2183_v3, %v1503_v52  ;;  %v1504_v20 = vadd.f32 %v1499_v15, %v1336_v57  ;;  %v1774_v22 = vpop.f32.mrb[51].mxu0 }
0x1395   :  { %v1518_v58 = vadd.f32 %v1514_v19, %v2029_v13  ;;  %v1515_v24 = vadd.f32 %v2183_v3, %v1504_v20 }
0x1397   :  { %v1522_v17 = vsel %vm76_vm0, %v1518_v58, 0.0  ;;  %v1519_v25 = vadd.f32 %v1515_v24, %v2034_v14 }
0x1398   :  { %1526 = vst [vmem:[#allocation2 + $0x10] sm:$0xff] %v1522_v17 }
0x1399   :  { %v1523_v61 = vsel %vm76_vm0, %v1519_v25, 0.0 }
0x139a   :  { %1527 = vst [vmem:[#allocation2 + $0x18] sm:$0xff] %v1523_v61 }
0x139b   :  { %1879 = shalt.err (!%p1876_p4)
}
0x139c   :  { %s1880_s2 = scalar_lea.hbm %s2279_s5, 512 }
0x139d   :  { %p1881_p5 = scmp.ne.s32.totalorder %s2279_s5, %s1880_s2  ;;  %p1884_p6 = scmp.lt.u32.totalorder %s1880_s2, %s2279_s5 }
0x139f   :  { %p1886_p7 = pnand %p1884_p6, %p1881_p5 }
0x13a1   :  { %1889 = shalt.err (!%p1886_p7)
}
0x13a2   :  { %s1903_s1 = smov 128   ;;  %s1904_s17 = smov 8  }
0x13a3   :  { %1539 = dma.vmem_to_hbm [thread:$0]  %s1534_s9, 512, %s2279_s5, [#allocation3], %s1903_s1, %s1903_s1, %s1904_s17  }
0x13a4   :  { %1890 = dma.done.wait [#allocation3], 512  }
0x13a5   :  { %1891 = vsyncadd [#allocation3], 4294966784 }
0x13a6   :  { %1543 = vsyncpa [#allocation3], 1 }

</bundles_post_ra>
